<compile_context>
chip_gen: v7x
topology: tpu7x:2x2x1
jax: 0.10.0
libtpu: 0.0.40
codegen_flags: <defaults>
</compile_context>

<pallas_src>
import jax
import jax.numpy as jnp
from jax.experimental import pallas as pl
from jax.experimental.pallas import tpu as pltpu

EPS = 1e-5  # nn.LayerNorm default


def _expand_norm_kernel(x_ref, wt_ref, mcols_ref, seg_ref, sg_ref, b_ref, o_ref):
    # x_ref    : (rows, dim)      bf16 tokens (rows = tb h-rows of W tokens each)
    # wt_ref   : (dim, 16*dim)    bf16 expand weight (pre-transposed)
    # mcols_ref: (dim, 16)        bf16; column j = per-chunk-j mean producing weights
    # seg_ref  : (16*dim, 16)     bf16 block-diagonal ones (chunk indicator columns)
    # sg_ref   : (16, 16*dim)     bf16; row j = gamma placed in chunk j, zeros elsewhere
    # b_ref    : (1, 16*dim)      f32 LayerNorm beta tiled 16x
    # o_ref    : (tb, 4, W, 4*dim) output block, axes (h-row, p1, w, p2*c)
    tb, _, w_len, c4 = o_ref.shape
    chunk = c4 // 4  # = dim, the LayerNorm width
    inv_n = 1.0 / chunk

    x = x_ref[...]

    # Linear(dim -> 16*dim): bf16 operands, f32 accumulation on the MXU.
    y = jnp.dot(x, wt_ref[...], preferred_element_type=jnp.float32)          # (rows, C)

    # Per-chunk mean folded into a tiny K=dim, N=16 matmul on x (no extra pass over y).
    mean = jnp.dot(x, mcols_ref[...], preferred_element_type=jnp.float32)    # (rows, 16)

    # Per-chunk E[y^2] for all 16 chunks via one segmented matmul (bf16 ops, f32 acc).
    s2 = jnp.dot((y * y).astype(jnp.bfloat16), seg_ref[...],
                 preferred_element_type=jnp.float32)                         # (rows, 16)

    var = jnp.maximum(s2 * inv_n - mean * mean, 0.0)   # single-pass E[x^2]-mean^2
    rstd = jax.lax.rsqrt(var + EPS)

    # Broadcast per-chunk scale/shift (gamma folded in) back across lanes on the MXU:
    #   a_bc[r, j*dim+c] = rstd_j * gamma_c ;  s_bc[r, j*dim+c] = mean_j*rstd_j*gamma_c
    a_bc = jnp.dot(rstd.astype(jnp.bfloat16), sg_ref[...],
                   preferred_element_type=jnp.float32)                       # (rows, C)
    s_bc = jnp.dot((mean * rstd).astype(jnp.bfloat16), sg_ref[...],
                   preferred_element_type=jnp.float32)                       # (rows, C)

    yn = y * a_bc - s_bc + b_ref[...]                                        # f32 (rows, C)

    # Pixel shuffle fused into 4 lane-dense slab stores (128-lane-aligned column slices):
    #   o[t, p1, w, p2*dim + c] = yn[t*W + w, p1*4*dim + p2*dim + c]
    for p1 in range(4):
        slab = yn[:, p1 * c4:(p1 + 1) * c4].reshape(tb, w_len, c4)
        o_ref[:, p1, :, :] = slab.astype(o_ref.dtype)


def _vmem_budget():
    """~75% of per-core VMEM (headroom for Mosaic internal scratch / semaphores)."""
    try:
        cap = int(pltpu.get_tpu_info().vmem_capacity_bytes)
    except Exception:
        cap = 64 * 2**20  # conservative (v7x-sized) fallback
    return cap * 3 // 4


def _pick_row_block(bh, w, dim, out_bytes, vmem_budget):
    """Pick tb (h-rows per grid step). Row tile derived from the VMEM budget; row block
    must be sublane-legal (tb*W % 8 == 0, or the whole array); prefer an even number of
    grid steps so both v7x TensorCores stay busy (harmless on v5e/v6e)."""
    C = 16 * dim
    per_row = (2 * 2 * dim            # bf16 input, double buffered
               + 2 * C * out_bytes    # output block, double buffered
               + 4 * C * 4)           # f32 temporaries (y, y*y, a_bc, s_bc/yn)
    const_bytes = (dim * C + C * 16 + 16 * C + dim * 16) * 2 + C * 4
    max_rows = max(w, (vmem_budget - const_bytes) // per_row)
    max_rows = min(max_rows, 4096)    # per-step overhead fully amortized well before this

    def legal(tb):
        rows = tb * w
        return rows <= max_rows and (rows % 8 == 0 or tb == bh)

    cands = [tb for tb in range(1, bh + 1) if bh % tb == 0 and legal(tb)]
    if not cands:
        # TODO(synk): pathological case (BH*W not sublane-friendly AND too big for VMEM)
        # would need row padding; fall back to the smallest sublane-legal divisor.
        cands = [tb for tb in range(1, bh + 1)
                 if bh % tb == 0 and (tb * w) % 8 == 0] or [bh]

    best = max(cands)
    even = [tb for tb in cands if (bh // tb) % 2 == 0]
    if even and max(even) * 2 >= best:   # accept even step count unless tile shrinks >2x
        best = max(even)
    return best, best * w


def final_patch_expand_x4(x, w, gamma, beta, H, W, *, out_dtype=jnp.bfloat16):
    """x: (B, H*W, dim); w: (16*dim, dim) [PyTorch nn.Linear weight layout];
    gamma/beta: (dim,). Returns (B, 16*H*W, dim), matching FinalPatchExpand_X4.
    Default output stream is bf16 (dominant HBM stream); pass out_dtype=jnp.float32
    to match the PyTorch output dtype exactly."""
    B, L, dim = x.shape
    assert L == H * W, "input feature has wrong size"
    C = 16 * dim
    c4 = 4 * dim
    BH = B * H
    out_bytes = jnp.dtype(out_dtype).itemsize

    budget = _vmem_budget()
    tb, rows = _pick_row_block(BH, W, dim, out_bytes, budget)
    grid = (BH // tb,)

    # bf16 input streams (f32 accumulation inside the kernel). In a real model keep the
    # weight stored pre-transposed / pre-cast so this prep is entirely free.
    x2d = x.reshape(B * L, dim).astype(jnp.bfloat16)
    wt = jnp.transpose(w).astype(jnp.bfloat16)                        # (dim, 16*dim)

    # Constant helper operands for the fused per-chunk LayerNorm (all exact-or-bf16).
    seg_f32 = jnp.repeat(jnp.eye(16, dtype=jnp.float32), dim, axis=0)  # (C, 16), 0/1
    seg = seg_f32.astype(jnp.bfloat16)
    # mcols[:, j] = mean-producing weights of chunk j: (w.T @ seg) / dim  -> (dim, 16)
    mcols = (jnp.transpose(w).astype(jnp.float32) @ seg_f32 * (1.0 / dim)
             ).astype(jnp.bfloat16)
    g_tiled = jnp.tile(gamma.astype(jnp.float32), 16)                  # (C,)
    sg = (jnp.transpose(seg_f32) * g_tiled[None, :]).astype(jnp.bfloat16)  # (16, C)
    b_t = jnp.tile(beta.astype(jnp.float32), 16).reshape(1, C)

    # Per-step VMEM estimate, consistent with the tile picker; limit stays within budget.
    est = (2 * rows * dim * 2
           + 2 * rows * C * out_bytes
           + (dim * C + C * 16 + 16 * C + dim * 16) * 2 + C * 4
           + 4 * rows * C * 4)
    vmem_limit = int(min(budget, max(32 * 2**20, int(1.5 * est))))

    # Grid-invariant operands: single-buffered (their index_maps never change).
    const_spec = lambda shape: pl.BlockSpec(shape, lambda i: (0, 0),
                                            pipeline_mode=pl.Buffered(1))

    out6 = pl.pallas_call(
        _expand_norm_kernel,
        out_shape=jax.ShapeDtypeStruct((BH, 4, W, c4), out_dtype),
        grid_spec=pltpu.PrefetchScalarGridSpec(
            num_scalar_prefetch=0,
            grid=grid,
            in_specs=[
                pl.BlockSpec((rows, dim), lambda i: (i, 0)),   # streamed tokens
                const_spec((dim, C)),                          # wt
                const_spec((dim, 16)),                         # mcols
                const_spec((C, 16)),                           # seg
                const_spec((16, C)),                           # segt * gamma
                const_spec((1, C)),                            # beta tiled
            ],
            out_specs=pl.BlockSpec((tb, 4, W, c4), lambda i: (i, 0, 0, 0)),
        ),
        compiler_params=pltpu.CompilerParams(
            dimension_semantics=("parallel",),
            vmem_limit_bytes=vmem_limit,
        ),
    )(x2d, wt, mcols, seg, sg, b_t)

    # out6 axes are (b*h, p1, w, p2*c): row-major order already equals
    # 'b (h p1) (w p2) c', so this is a pure reshape (no transpose pass).
    return out6.reshape(B, 16 * H * W, dim)


def final_patch_expand_x4_reference(x, w, gamma, beta, H, W):
    """Pure-JAX reference matching the PyTorch forward semantics (f32)."""
    B, L, dim = x.shape
    y = jnp.einsum("bld,ed->ble", x, w, precision="highest")         # (B, L, 16*dim)
    y = y.reshape(B, H, W, 4, 4, dim)
    y = jnp.transpose(y, (0, 1, 3, 2, 4, 5)).reshape(B, 16 * H * W, dim)
    mean = jnp.mean(y, axis=-1, keepdims=True)
    var = jnp.mean((y - mean) ** 2, axis=-1, keepdims=True)
    return (y - mean) * jax.lax.rsqrt(var + EPS) * gamma + beta


if __name__ == "__main__":
    # input_resolution=(8, 8), dim=32, dim_scale=4 -> output (B, 16*H*W, dim)
    B, H, W, dim = 2, 8, 8, 32
    key = jax.random.PRNGKey(0)
    kx, kw, kg, kb = jax.random.split(key, 4)

    x = jax.random.normal(kx, (B, H * W, dim), dtype=jnp.float32)
    # nn.Linear(dim, 16*dim, bias=False) weight layout is (16*dim, dim).
    w = jax.random.normal(kw, (16 * dim, dim), dtype=jnp.float32) * (1.0 / jnp.sqrt(dim))
    gamma = 1.0 + 0.1 * jax.random.normal(kg, (dim,), dtype=jnp.float32)
    beta = 0.1 * jax.random.normal(kb, (dim,), dtype=jnp.float32)

    out = jax.block_until_ready(final_patch_expand_x4(x, w, gamma, beta, H, W))
    ref = jax.block_until_ready(final_patch_expand_x4_reference(x, w, gamma, beta, H, W))

    assert out.shape == (B, 16 * H * W, dim), out.shape
    assert out.dtype == jnp.bfloat16, out.dtype

    # bf16 input/output streams + bf16 helper matmul operands (f32 accumulation) =>
    # loose absolute tolerance; real shuffle/norm bugs would give O(1) errors everywhere.
    err = jnp.abs(out.astype(jnp.float32) - ref)
    max_err = float(jnp.max(err))
    mean_err = float(jnp.mean(err))
    assert max_err < 1.5e-1, ("max_err", max_err)
    assert mean_err < 1.5e-2, ("mean_err", mean_err)
    print("KERNEL_OK")
</pallas_src>

<mosaic_0001>
module attributes {stable_mosaic.version = 11 : i64} {
  func.func @_expand_norm_kernel(%arg0: i32, %arg1: memref<64x32xbf16, #tpu.memory_space<vmem>>, %arg2: memref<32x512xbf16, #tpu.memory_space<vmem>>, %arg3: memref<32x16xbf16, #tpu.memory_space<vmem>>, %arg4: memref<512x16xbf16, #tpu.memory_space<vmem>>, %arg5: memref<16x512xbf16, #tpu.memory_space<vmem>>, %arg6: memref<1x512xf32, #tpu.memory_space<vmem>>, %arg7: memref<8x4x8x128xbf16, #tpu.memory_space<vmem>>) attributes {dimension_semantics = [#tpu.dimension_semantics<parallel>], iteration_bounds = array<i64: 2>, scalar_prefetch = 0 : i64, scratch_operands = 0 : i64, tpu.core_type = #tpu.core_type<tc>, window_params = [{transform_indices = @transform_0, window_bounds = array<i64: 64, 32>}, {pipeline_mode = #tpu.pipeline_mode<synchronous>, transform_indices = @transform_1, window_bounds = array<i64: 32, 512>}, {pipeline_mode = #tpu.pipeline_mode<synchronous>, transform_indices = @transform_2, window_bounds = array<i64: 32, 16>}, {pipeline_mode = #tpu.pipeline_mode<synchronous>, transform_indices = @transform_3, window_bounds = array<i64: 512, 16>}, {pipeline_mode = #tpu.pipeline_mode<synchronous>, transform_indices = @transform_4, window_bounds = array<i64: 16, 512>}, {pipeline_mode = #tpu.pipeline_mode<synchronous>, transform_indices = @transform_5, window_bounds = array<i64: 1, 512>}, {transform_indices = @transform_6, window_bounds = array<i64: 8, 4, 8, 128>}]} {
    %c0 = arith.constant 0 : index
    %c0_0 = arith.constant 0 : index
    %0 = vector.load %arg1[%c0, %c0_0] : memref<64x32xbf16, #tpu.memory_space<vmem>>, vector<64x32xbf16>
    %c0_1 = arith.constant 0 : index
    %c0_2 = arith.constant 0 : index
    %1 = vector.load %arg2[%c0_1, %c0_2] : memref<32x512xbf16, #tpu.memory_space<vmem>>, vector<32x512xbf16>
    %cst = arith.constant dense<0.000000e+00> : vector<64x512xf32>
    %2 = tpu.matmul %0, %1, %cst {dimension_numbers = #tpu.dot_dimension_numbers<[1], [0], [0], [1], [0, 0, 1, 1], [], []>} : vector<64x32xbf16>, vector<32x512xbf16>, vector<64x512xf32> -> vector<64x512xf32>
    %c0_3 = arith.constant 0 : index
    %c0_4 = arith.constant 0 : index
    %3 = vector.load %arg3[%c0_3, %c0_4] : memref<32x16xbf16, #tpu.memory_space<vmem>>, vector<32x16xbf16>
    %cst_5 = arith.constant dense<0.000000e+00> : vector<64x16xf32>
    %4 = tpu.matmul %0, %3, %cst_5 {dimension_numbers = #tpu.dot_dimension_numbers<[1], [0], [0], [1], [0, 0, 1, 1], [], []>} : vector<64x32xbf16>, vector<32x16xbf16>, vector<64x16xf32> -> vector<64x16xf32>
    %5 = arith.mulf %2, %2 : vector<64x512xf32>
    %6 = arith.truncf %5 : vector<64x512xf32> to vector<64x512xbf16>
    %c0_6 = arith.constant 0 : index
    %c0_7 = arith.constant 0 : index
    %7 = vector.load %arg4[%c0_6, %c0_7] : memref<512x16xbf16, #tpu.memory_space<vmem>>, vector<512x16xbf16>
    %cst_8 = arith.constant dense<0.000000e+00> : vector<64x16xf32>
    %8 = tpu.matmul %6, %7, %cst_8 {dimension_numbers = #tpu.dot_dimension_numbers<[1], [0], [0], [1], [0, 0, 1, 1], [], []>} : vector<64x512xbf16>, vector<512x16xbf16>, vector<64x16xf32> -> vector<64x16xf32>
    %cst_9 = arith.constant 3.125000e-02 : f32
    %9 = vector.broadcast %cst_9 : f32 to vector<64x16xf32>
    %10 = arith.mulf %8, %9 : vector<64x16xf32>
    %11 = arith.mulf %4, %4 : vector<64x16xf32>
    %12 = arith.subf %10, %11 : vector<64x16xf32>
    %cst_10 = arith.constant 0.000000e+00 : f32
    %13 = vector.broadcast %cst_10 : f32 to vector<64x16xf32>
    %14 = arith.maximumf %12, %13 : vector<64x16xf32>
    %cst_11 = arith.constant 9.99999974E-6 : f32
    %15 = vector.broadcast %cst_11 : f32 to vector<64x16xf32>
    %16 = arith.addf %14, %15 : vector<64x16xf32>
    %17 = math.rsqrt %16 : vector<64x16xf32>
    %18 = arith.truncf %17 : vector<64x16xf32> to vector<64x16xbf16>
    %c0_12 = arith.constant 0 : index
    %c0_13 = arith.constant 0 : index
    %19 = vector.load %arg5[%c0_12, %c0_13] : memref<16x512xbf16, #tpu.memory_space<vmem>>, vector<16x512xbf16>
    %cst_14 = arith.constant dense<0.000000e+00> : vector<64x512xf32>
    %20 = tpu.matmul %18, %19, %cst_14 {dimension_numbers = #tpu.dot_dimension_numbers<[1], [0], [0], [1], [0, 0, 1, 1], [], []>} : vector<64x16xbf16>, vector<16x512xbf16>, vector<64x512xf32> -> vector<64x512xf32>
    %21 = arith.mulf %4, %17 : vector<64x16xf32>
    %22 = arith.truncf %21 : vector<64x16xf32> to vector<64x16xbf16>
    %c0_15 = arith.constant 0 : index
    %c0_16 = arith.constant 0 : index
    %23 = vector.load %arg5[%c0_15, %c0_16] : memref<16x512xbf16, #tpu.memory_space<vmem>>, vector<16x512xbf16>
    %cst_17 = arith.constant dense<0.000000e+00> : vector<64x512xf32>
    %24 = tpu.matmul %22, %23, %cst_17 {dimension_numbers = #tpu.dot_dimension_numbers<[1], [0], [0], [1], [0, 0, 1, 1], [], []>} : vector<64x16xbf16>, vector<16x512xbf16>, vector<64x512xf32> -> vector<64x512xf32>
    %25 = arith.mulf %2, %20 : vector<64x512xf32>
    %26 = arith.subf %25, %24 : vector<64x512xf32>
    %c0_18 = arith.constant 0 : index
    %c0_19 = arith.constant 0 : index
    %27 = vector.load %arg6[%c0_18, %c0_19] : memref<1x512xf32, #tpu.memory_space<vmem>>, vector<1x512xf32>
    %28 = vector.broadcast %27 : vector<1x512xf32> to vector<64x512xf32>
    %29 = arith.addf %26, %28 : vector<64x512xf32>
    %30 = vector.extract_strided_slice %29 {offsets = [0, 0], sizes = [64, 128], strides = [1, 1]} : vector<64x512xf32> to vector<64x128xf32>
    %31 = vector.shape_cast %30 : vector<64x128xf32> to vector<8x8x128xf32>
    %32 = arith.truncf %31 : vector<8x8x128xf32> to vector<8x8x128xbf16>
    %c0_20 = arith.constant 0 : index
    %c0_21 = arith.constant 0 : index
    %c0_22 = arith.constant 0 : index
    %c0_23 = arith.constant 0 : index
    %33 = vector.load %arg7[%c0_20, %c0_21, %c0_22, %c0_23] : memref<8x4x8x128xbf16, #tpu.memory_space<vmem>>, vector<8x1x8x128xbf16>
    %34 = vector.shape_cast %33 : vector<8x1x8x128xbf16> to vector<8x8x128xbf16>
    %35 = vector.shape_cast %32 : vector<8x8x128xbf16> to vector<8x1x8x128xbf16>
    tpu.vector_store %arg7[%c0_20, %c0_21, %c0_22, %c0_23], %35 {strides = array<i32>} : memref<8x4x8x128xbf16, #tpu.memory_space<vmem>>, vector<8x1x8x128xbf16>,
    %36 = vector.extract_strided_slice %29 {offsets = [0, 128], sizes = [64, 128], strides = [1, 1]} : vector<64x512xf32> to vector<64x128xf32>
    %37 = vector.shape_cast %36 : vector<64x128xf32> to vector<8x8x128xf32>
    %38 = arith.truncf %37 : vector<8x8x128xf32> to vector<8x8x128xbf16>
    %c0_24 = arith.constant 0 : index
    %c1 = arith.constant 1 : index
    %c0_25 = arith.constant 0 : index
    %c0_26 = arith.constant 0 : index
    %39 = vector.load %arg7[%c0_24, %c1, %c0_25, %c0_26] : memref<8x4x8x128xbf16, #tpu.memory_space<vmem>>, vector<8x1x8x128xbf16>
    %40 = vector.shape_cast %39 : vector<8x1x8x128xbf16> to vector<8x8x128xbf16>
    %41 = vector.shape_cast %38 : vector<8x8x128xbf16> to vector<8x1x8x128xbf16>
    tpu.vector_store %arg7[%c0_24, %c1, %c0_25, %c0_26], %41 {strides = array<i32>} : memref<8x4x8x128xbf16, #tpu.memory_space<vmem>>, vector<8x1x8x128xbf16>,
    %42 = vector.extract_strided_slice %29 {offsets = [0, 256], sizes = [64, 128], strides = [1, 1]} : vector<64x512xf32> to vector<64x128xf32>
    %43 = vector.shape_cast %42 : vector<64x128xf32> to vector<8x8x128xf32>
    %44 = arith.truncf %43 : vector<8x8x128xf32> to vector<8x8x128xbf16>
    %c0_27 = arith.constant 0 : index
    %c2 = arith.constant 2 : index
    %c0_28 = arith.constant 0 : index
    %c0_29 = arith.constant 0 : index
    %45 = vector.load %arg7[%c0_27, %c2, %c0_28, %c0_29] : memref<8x4x8x128xbf16, #tpu.memory_space<vmem>>, vector<8x1x8x128xbf16>
    %46 = vector.shape_cast %45 : vector<8x1x8x128xbf16> to vector<8x8x128xbf16>
    %47 = vector.shape_cast %44 : vector<8x8x128xbf16> to vector<8x1x8x128xbf16>
    tpu.vector_store %arg7[%c0_27, %c2, %c0_28, %c0_29], %47 {strides = array<i32>} : memref<8x4x8x128xbf16, #tpu.memory_space<vmem>>, vector<8x1x8x128xbf16>,
    %48 = vector.extract_strided_slice %29 {offsets = [0, 384], sizes = [64, 128], strides = [1, 1]} : vector<64x512xf32> to vector<64x128xf32>
    %49 = vector.shape_cast %48 : vector<64x128xf32> to vector<8x8x128xf32>
    %50 = arith.truncf %49 : vector<8x8x128xf32> to vector<8x8x128xbf16>
    %c0_30 = arith.constant 0 : index
    %c3 = arith.constant 3 : index
    %c0_31 = arith.constant 0 : index
    %c0_32 = arith.constant 0 : index
    %51 = vector.load %arg7[%c0_30, %c3, %c0_31, %c0_32] : memref<8x4x8x128xbf16, #tpu.memory_space<vmem>>, vector<8x1x8x128xbf16>
    %52 = vector.shape_cast %51 : vector<8x1x8x128xbf16> to vector<8x8x128xbf16>
    %53 = vector.shape_cast %50 : vector<8x8x128xbf16> to vector<8x1x8x128xbf16>
    tpu.vector_store %arg7[%c0_30, %c3, %c0_31, %c0_32], %53 {strides = array<i32>} : memref<8x4x8x128xbf16, #tpu.memory_space<vmem>>, vector<8x1x8x128xbf16>,
    return
  }
  func.func @transform_0(%arg0: i32) -> (i32, i32) {
    %c0_i32 = arith.constant 0 : i32
    %c0_i32_0 = arith.constant 0 : i32
    return %arg0, %c0_i32 : i32, i32
  }
  func.func @transform_1(%arg0: i32) -> (i32, i32) {
    %c0_i32 = arith.constant 0 : i32
    %c0_i32_0 = arith.constant 0 : i32
    %c0_i32_1 = arith.constant 0 : i32
    return %c0_i32, %c0_i32_0 : i32, i32
  }
  func.func @transform_2(%arg0: i32) -> (i32, i32) {
    %c0_i32 = arith.constant 0 : i32
    %c0_i32_0 = arith.constant 0 : i32
    %c0_i32_1 = arith.constant 0 : i32
    return %c0_i32, %c0_i32_0 : i32, i32
  }
  func.func @transform_3(%arg0: i32) -> (i32, i32) {
    %c0_i32 = arith.constant 0 : i32
    %c0_i32_0 = arith.constant 0 : i32
    %c0_i32_1 = arith.constant 0 : i32
    return %c0_i32, %c0_i32_0 : i32, i32
  }
  func.func @transform_4(%arg0: i32) -> (i32, i32) {
    %c0_i32 = arith.constant 0 : i32
    %c0_i32_0 = arith.constant 0 : i32
    %c0_i32_1 = arith.constant 0 : i32
    return %c0_i32, %c0_i32_0 : i32, i32
  }
  func.func @transform_5(%arg0: i32) -> (i32, i32) {
    %c0_i32 = arith.constant 0 : i32
    %c0_i32_0 = arith.constant 0 : i32
    %c0_i32_1 = arith.constant 0 : i32
    return %c0_i32, %c0_i32_0 : i32, i32
  }
  func.func @transform_6(%arg0: i32) -> (i32, i32, i32, i32) {
    %c0_i32 = arith.constant 0 : i32
    %c0_i32_0 = arith.constant 0 : i32
    %c0_i32_1 = arith.constant 0 : i32
    %c0_i32_2 = arith.constant 0 : i32
    return %arg0, %c0_i32, %c0_i32_0, %c0_i32_1 : i32, i32, i32, i32
  }
}

</mosaic_0001>

<bundles_post_ra>
// kernel: tpu_custom_call.1
= control target key start
LH: loop header
LB: loop body
LE: loop exit
PB: predicated region body
PF: predicated region fallthrough
CT: control target
= control target key end

     0   :  { %11 = vsyncpa [#allocation3], 0  ;;  %s2785_s0 = inlined_call_operand.vmem [shape: bf16[128,32], index: 0, kind: input, shape index: {}]   ;;  %s2786_s1 = inlined_call_operand.vmem [shape: bf16[32,512], index: 1, kind: input, shape index: {}]   ;;  %s2787_s2 = inlined_call_operand.vmem [shape: bf16[32,16], index: 2, kind: input, shape index: {}]   ;;  %s2788_s3 = inlined_call_operand.vmem [shape: bf16[512,16], index: 3, kind: input, shape index: {}]   ;;  %s2789_s4 = inlined_call_operand.vmem [shape: bf16[16,512], index: 4, kind: input, shape index: {}]   ;;  %s2790_s5 = inlined_call_operand.vmem [shape: f32[1,512], index: 5, kind: input, shape index: {}]   ;;  %s2791_s6 = inlined_call_operand.hbm [shape: bf16[16,4,8,128], index: 6, kind: output, shape index: {}]  }
   0x1   :  { %13 = vsyncpa [#allocation3 + $0x1], 0  ;;  %s2107_s21 = smov 0   ;;  %s2109_s22 = smov 0  }
   0x2   :  { %s2111_s23 = smov 0   ;;  %s2113_s24 = smov 0  }
   0x3 LB: > { %s2128_s25 = sadd.s32 4294967295, %s2066_s24   ;;  %s1671_s26 = sadd.s32 4294967294, %s2066_s24   ;;  %s2066_s24 = sphi %s2113_s24, %s2818_s24   ;;  %s2062_s23 = sphi %s2111_s23, %s2817_s23   ;;  %s2058_s22 = sphi %s2109_s22, %s2816_s22   ;;  %s2054_s21 = sphi %s2107_s21, %s2815_s21  }
   0x4   : > { %s2132_s27 = sadd.s32 1, %s2066_s24   ;;  %s157_s28 = sadd.s32 1, %s2062_s23 }
   0x5   : > { %s154_s29 = ssub.s32 %s2066_s24, %s2132_s27  ;;  %p167_p0 = scmp.ne.s32.totalorder %s2062_s23, %s2058_s22 }
   0x6   : > { %p155_p1 = scmp.eq.s32.totalorder %s154_s29, 0  ;;  %p168_p2 = scmp.eq.s32.totalorder %s2128_s25, 1 }
   0x7   : > { %p173_p3 = scmp.ne.s32.totalorder %s2058_s22, %s2054_s21  ;;  %p174_p4 = scmp.eq.s32.totalorder %s1671_s26, 1 }
   0x8   : > { %s2143_s30 = scalar_select %p155_p1, %s2062_s23, %s157_s28  }
   0x9   : > { %p2145_p5 = por %p168_p2, %p167_p0  ;;  %p2149_p6 = por %p174_p4, %p173_p3 }
   0xa   : > { %p1674_p7 = scmp.ge.s32.totalorder %s2066_s24, 1  ;;  %p216_p8 = scmp.lt.s32.totalorder %s2066_s24, 3 }
   0xc   : > { %p217_p9 = pnand %p1674_p7, %p216_p8 }
   0xe   : > { %220 = sbr.rel (%p217_p9) target bundleno = 800 (0x320), region = 44 }
  0x15   : > { %v1932_v0 = vld [vmem:[%s2786_s1 + $0x4] ss:$16 sps:$4 sm:$0xff]   ;;  %s1676_s11 = sshll.u32 %s2128_s25, 3  ;;  %v1934_v1 = vld [vmem:[%s2786_s1] ss:$16 sps:$4 sm:$0xff]   ;;  %v2792_v2 = vmov 0  }
  0x16   : > { %375 = vmatprep.mubr.bf16.mxu0 %v2792_v2  ;;  %395 = vmatprep.mubr.bf16.mxu1 %v2792_v2  ;;  %p247_p10 = scmp.lt.s32.totalorder %s1676_s11, 15  ;;  %v1935_v3 = vld [vmem:[%s2786_s1 + $0x24] ss:$16 sps:$4 sm:$0xff]   ;;  %v1937_v4 = vld [vmem:[%s2786_s1 + $0x20] ss:$16 sps:$4 sm:$0xff]   ;;  %vm330_vm0 = vcmask 261120  }
  0x17   : > { %343 = vmatprep.subr.bf16.mxu0 %v1932_v0  ;;  %1886 = vmatprep.subr.bf16.mxu1 %v1932_v0  ;;  %v1942_v5 = vld [vmem:[%s2786_s1 + $0xc] ss:$16 sps:$4 sm:$0xff]   ;;  %v1940_v6 = vld [vmem:[%s2786_s1 + $0x8] ss:$16 sps:$4 sm:$0xff]   ;;  %v1949_v11 = vld [vmem:[%s2787_s2] sm:$0xff]   ;;  %vm1080_vm1 = vcmask 130048  }
  0x18   : > { %344 = vmatpush1.bf16.msra.mxu0 %v1934_v1  ;;  %1888 = vmatpush1.bf16.msra.mxu1 %v1934_v1  ;;  %s2820_s11 = smov (!%p247_p10, %s1676_s11), 15  ;;  %v1947_v7 = vld [vmem:[%s2786_s1 + $0x2c] ss:$16 sps:$4 sm:$0xff]   ;;  %v1945_v10 = vld [vmem:[%s2786_s1 + $0x28] ss:$16 sps:$4 sm:$0xff]   ;;  %v1948_v12 = vld [vmem:[%s2788_s3 + $0x40] sm:$0xff]  }
  0x19   : > { %345 = vmatprep.subr.bf16.mxu0 %v1935_v3  ;;  %1887 = vmatprep.subr.bf16.mxu1 %v1935_v3  ;;  %s1677_s20 = sshll.u32 %s2820_s11, 2  ;;  %v1954_v15 = vld [vmem:[%s2787_s2 + $0x8] sm:$0xff]   ;;  %v1959_v16 = vld [vmem:[%s2788_s3 + $0xc0] sm:$0xff]   ;;  %v1953_v22 = vld [vmem:[%s2788_s3 + $0x50] sm:$0xff]   ;;  %s243_s18 = sand.u32 1, %s2058_s22  }
  0x1a   : > { %s250_s10 = scalar_lea.vmem %s2785_s0, %s1677_s20  ;;  %v1950_v17 = vld [vmem:[%s2788_s3] sm:$0xff]   ;;  %v1951_v18 = vld [vmem:[%s2788_s3 + $0x48] sm:$0xff]   ;;  %v1955_v24 = vld [vmem:[%s2788_s3 + $0x10] sm:$0xff]   ;;  %s1675_s19 = sshll.u32 %s243_s18, 7 }
  0x1b   : > { %v1938_v8 = vld [vmem:[%s250_s10] sm:$0xff]   ;;  %v1939_v9 = vld [vmem:[%s250_s10 + $0x10] sm:$0xff]   ;;  %v1943_v13 = vld [vmem:[%s250_s10 + $0x8] sm:$0xff]   ;;  %s2651_s20 = scalar_lea.vmem [#allocation2], %s1675_s19  ;;  %s1787_s26 = sshll.u32 %s2128_s25, 11 }
  0x1c   : > { %346 = vmatpush1.bf16.msra.mxu0 %v1937_v4  ;;  %1889 = vmatpush1.bf16.msra.mxu1 %v1937_v4  ;;  %v1944_v14 = vld [vmem:[%s250_s10 + $0x18] sm:$0xff]   ;;  %v1961_v19 = vld [vmem:[%s2788_s3 + $0x80] sm:$0xff]   ;;  %v1952_v20 = vld [vmem:[%s2788_s3 + $0x8] sm:$0xff]   ;;  %s1609_s28 = sshll.u32 %s2651_s20, 4  ;;  %s2732_s9 = scalar_lea.hbm %s2791_s6, %s1787_s26  ;;  %s2734_s28 = int_to_ptr.vmem [resolvable:$true] %s1609_s28 }
  0x1d   : > { %416 = vmatprep.subr.bf16.mxu1 %v1942_v5  ;;  %1874 = vmatprep.subr.bf16.mxu0 %v1949_v11  ;;  %v1963_v21 = vld [vmem:[%s2788_s3 + $0xc8] sm:$0xff]   ;;  %v1956_v25 = vld [vmem:[%s2788_s3 + $0x58] sm:$0xff]   ;;  %v1958_v27 = vld [vmem:[%s2788_s3 + $0x60] sm:$0xff]   ;;  %s2744_s10 = scalar_lea.sflag [#allocation3], %s243_s18  ;;  %s2004_s12 = scalar_lea.vmem %s2734_s28, 2048 }
  0x1e   : > { %v1965_v23 = vld [vmem:[%s2788_s3 + $0x88] sm:$0xff]   ;;  %v1957_v26 = vld [vmem:[%s2788_s3 + $0x18] sm:$0xff]   ;;  %v1960_v28 = vld [vmem:[%s2788_s3 + $0x20] sm:$0xff]   ;;  %p2005_p11 = scmp.ne.s32.totalorder %s2734_s28, %s2004_s12  ;;  %s2069_s13 = smov [#allocation2]  }
  0x1f   : > { %1690 = vmatmul.mubr.msk.bf16.vlgmr.msra.gmra.mrb[0].mxu0 %vm330_vm0, %v1938_v8  ;;  %1692 = vmatmul.mubr.msk.bf16.vlgmr.msra.gmra.mrb[0].mxu1 %vm330_vm0, %v1939_v9  ;;  %v1962_v29 = vld [vmem:[%s2788_s3 + $0x68] sm:$0xff]   ;;  %v1966_v31 = vld [vmem:[%s2788_s3 + $0x70] sm:$0xff]   ;;  %v1970_v35 = vld [vmem:[%s2788_s3 + $0x78] sm:$0xff]   ;;  %s2008_s11 = sshll.u32 %s2069_s13, 4  ;;  %s2009_s11 = int_to_ptr.vmem [resolvable:$false] %s2008_s11 }
  0x20   : > { %417 = vmatpush1.bf16.msra.mxu1 %v1940_v6  ;;  %385 = vmatprep.mubr.bf16.mxu0 %v2792_v2  ;;  %v1964_v30 = vld [vmem:[%s2788_s3 + $0x28] sm:$0xff]   ;;  %v1967_v32 = vld [vmem:[%s2788_s3 + $0xd0] sm:$0xff]   ;;  %v1971_v36 = vld [vmem:[%s2788_s3 + $0xd8] sm:$0xff]   ;;  %p2006_p12 = pnand %p2005_p11, %p2145_p5  ;;  %s2010_s14 = scalar_lea.vmem %s2009_s11, 4096 }
  0x21   : > { %405 = vmatprep.mubr.bf16.mxu1 %v2792_v2  ;;  %418 = vmatprep.subr.bf16.mxu1 %v1947_v7  ;;  %v1968_v33 = vld [vmem:[%s2788_s3 + $0x30] sm:$0xff]   ;;  %v1972_v37 = vld [vmem:[%s2788_s3 + $0x38] sm:$0xff]   ;;  %v1974_v39 = vld [vmem:[%s2788_s3 + $0xe0] sm:$0xff]   ;;  %p2011_p0 = scmp.lt.s32.totalorder %s2734_s28, %s2009_s11  ;;  %p2012_p1 = scmp.lt.s32.totalorder %s2010_s14, %s2004_s12 }
  0x22   : > { %1875 = vmatpush3.bf16.msra.mxu0 %v1949_v11  ;;  %v1969_v34 = vld [vmem:[%s2788_s3 + $0x90] sm:$0xff]   ;;  %v1973_v38 = vld [vmem:[%s2788_s3 + $0x98] sm:$0xff]   ;;  %v1975_v40 = vld [vmem:[%s2788_s3 + $0xa0] sm:$0xff]   ;;  %p2007_p13 = pneg %p2006_p12 }
  0x23   : > { %1876 = vmatprep.subr.bf16.mxu0 %v1954_v15  ;;  %v1976_v41 = vld [vmem:[%s2788_s3 + $0xe8] sm:$0xff]   ;;  %v1978_v43 = vld [vmem:[%s2788_s3 + $0xf0] sm:$0xff]   ;;  %v1980_v45 = vld [vmem:[%s2788_s3 + $0xf8] sm:$0xff]   ;;  %p2013_p2 = por %p2012_p1, %p2011_p0 }
  0x24   : > { %419 = vmatpush1.bf16.msra.mxu1 %v1945_v10  ;;  %v1977_v42 = vld [vmem:[%s2788_s3 + $0xa8] sm:$0xff]   ;;  %v1979_v44 = vld [vmem:[%s2788_s3 + $0xb0] sm:$0xff]   ;;  %v1981_v46 = vld [vmem:[%s2788_s3 + $0xb8] sm:$0xff]  }
  0x25   : > { %1794 = vmatprep.subr.bf16.mxu1 %v1948_v12  ;;  %p2014_p3 = pnand %p2013_p2, %p2007_p13 }
  0x26   : > { %1877 = vmatpush3.bf16.msra.mxu0 %v1954_v15 }
  0x27   : > { %1691 = vmatmul.mubr.msk.bf16.gmra.mrb[4].mxu0 %vm330_vm0, %v1943_v13  ;;  %1693 = vmatmul.mubr.msk.bf16.gmra.mrb[4].mxu1 %vm330_vm0, %v1944_v14 }
  0x28   : > { %448 = vmatprep.mubr.bf16.mxu1 %v2792_v2  ;;  %1878 = vmatprep.mubr.msk.bf16.mxu0 %vm330_vm0, %v1938_v8 }
  0x29   : > { %1834 = vmatprep.subr.bf16.mxu0 %v1959_v16 }
  0x2f   : > { %1694 = vmatmul.mubr.msk.bf16.vlgmr.msra.gmra.mrb[8].mxu1 %vm330_vm0, %v1938_v8  ;;  %1879 = vmatmul.mubr.msk.bf16.vlgmr.msra.gmra.mrb[8].mxu0 %vm330_vm0, %v1943_v13 }
  0x30   : > { %458 = vmatprep.mubr.bf16.mxu1 %v2792_v2  ;;  %1795 = vmatpush3.bf16.msra.mxu1 %v1950_v17 }
  0x31   : > { %1796 = vmatprep.subr.bf16.mxu1 %v1951_v18  ;;  %1835 = vmatpush3.bf16.msra.mxu0 %v1961_v19 }
  0x32   : > { %1836 = vmatprep.subr.bf16.mxu0 %v1963_v21  ;;  %1882 = vmatprep.mubr.msk.bf16.mxu0 %vm330_vm0, %v1939_v9 }
  0x34   : > { %1797 = vmatpush3.bf16.msra.mxu1 %v1952_v20 }
  0x35   : > { %1798 = vmatprep.subr.bf16.mxu1 %v1953_v22  ;;  %1837 = vmatpush3.bf16.msra.mxu0 %v1965_v23 }
  0x36   : > { %1838 = vmatprep.subr.bf16.mxu0 %v1967_v32 }
  0x37   : > { %1695 = vmatmul.mubr.msk.bf16.gmra.mrb[12].mxu1 %vm330_vm0, %v1943_v13  ;;  %1883 = vmatmul.mubr.msk.bf16.gmra.mrb[12].mxu0 %vm330_vm0, %v1944_v14 }
  0x38   : > { %468 = vmatprep.mubr.bf16.mxu1 %v2792_v2  ;;  %1799 = vmatpush3.bf16.msra.mxu1 %v1955_v24 }
  0x39   : > { %1800 = vmatprep.subr.bf16.mxu1 %v1956_v25  ;;  %1839 = vmatpush3.bf16.msra.mxu0 %v1969_v34 }
  0x3a   : > { %1840 = vmatprep.subr.bf16.mxu0 %v1971_v36 }
  0x3c   : > { %1801 = vmatpush3.bf16.msra.mxu1 %v1957_v26 }
  0x3d   : > { %1802 = vmatprep.subr.bf16.mxu1 %v1958_v27  ;;  %1841 = vmatpush3.bf16.msra.mxu0 %v1973_v38 }
  0x3e   : > { %1842 = vmatprep.subr.bf16.mxu0 %v1974_v39 }
  0x3f   : > { %1696 = vmatmul.mubr.msk.bf16.gmra.mrb[16].mxu1 %vm330_vm0, %v1939_v9 }
  0x40   : > { %478 = vmatprep.mubr.bf16.mxu1 %v2792_v2  ;;  %1803 = vmatpush3.bf16.msra.mxu1 %v1960_v28 }
  0x41   : > { %1804 = vmatprep.subr.bf16.mxu1 %v1962_v29  ;;  %1843 = vmatpush3.bf16.msra.mxu0 %v1975_v40 }
  0x42   : > { %1844 = vmatprep.subr.bf16.mxu0 %v1976_v41 }
  0x44   : > { %1805 = vmatpush3.bf16.msra.mxu1 %v1964_v30 }
  0x45   : > { %1806 = vmatprep.subr.bf16.mxu1 %v1966_v31  ;;  %1845 = vmatpush3.bf16.msra.mxu0 %v1977_v42 }
  0x46   : > { %1846 = vmatprep.subr.bf16.mxu0 %v1978_v43 }
  0x47   : > { %1697 = vmatmul.mubr.msk.bf16.gmra.mrb[20].mxu1 %vm330_vm0, %v1944_v14 }
  0x48   : > { %1807 = vmatpush3.bf16.msra.mxu1 %v1968_v33 }
  0x49   : > { %1808 = vmatprep.subr.bf16.mxu1 %v1970_v35  ;;  %1847 = vmatpush3.bf16.msra.mxu0 %v1979_v44 }
  0x4a   : > { %1848 = vmatprep.subr.bf16.mxu0 %v1980_v45 }
  0x4c   : > { %1809 = vmatpush3.bf16.msra.mxu1 %v1972_v37 }
  0x4d   : > { %1849 = vmatpush3.bf16.msra.mxu0 %v1981_v46 }
  0xf2   : > { %v2305_v47 = vpop.f32.mrb[0].mxu0  ;;  %v2307_v48 = vpop.f32.mrb[0].mxu1 }
  0xf3   : > { %v570_v49 = vmul.f32 %v2305_v47, %v2305_v47  ;;  %v2311_v50 = vpop.f32.mrb[1].mxu0  ;;  %v2313_v51 = vpop.f32.mrb[1].mxu1  ;;  %v586_v55 = vmul.f32 %v2307_v48, %v2307_v48 }
  0xf4   : > { %v571_v52 = vmul.f32 %v2311_v50, %v2311_v50  ;;  %v2317_v53 = vpop.f32.mrb[2].mxu0  ;;  %v2319_v54 = vpop.f32.mrb[2].mxu1  ;;  %v587_v60 = vmul.f32 %v2313_v51, %v2313_v51 }
  0xf5   : > { %v574_v56 = vmul.f32 %v2317_v53, %v2317_v53  ;;  %v590_v57 = vmul.f32 %v2319_v54, %v2319_v54  ;;  %v2327_v58 = vpop.f32.mrb[3].mxu0  ;;  %v2329_v59 = vpop.f32.mrb[3].mxu1 }
  0xf6   : > { %v575_v61 = vmul.f32 %v2327_v58, %v2327_v58  ;;  %v591_v62 = vmul.f32 %v2329_v59, %v2329_v59 }
  0xf7   : > { %v602_v63 = vpack.c.bf16 %v574_v56, %v570_v49  ;;  %v610_v0 = vpack.c.bf16 %v590_v57, %v586_v55 }
  0xf8   : > { %v603_v1 = vpack.c.bf16 %v575_v61, %v571_v52  ;;  %v611_v3 = vpack.c.bf16 %v591_v62, %v587_v60 }
  0xfa   : > { %v2337_v4 = vpop.f32.mrb[4].mxu0  ;;  %v2339_v5 = vpop.f32.mrb[4].mxu1  ;;  %906 = vmatprep.mubr.bf16.mxu1 %v603_v1 }
  0xfb   : > { %v578_v6 = vmul.f32 %v2337_v4, %v2337_v4  ;;  %v2343_v7 = vpop.f32.mrb[5].mxu0  ;;  %v2345_v8 = vpop.f32.mrb[5].mxu1  ;;  %907 = vmatmul.mubr.bf16.vlgmr.msra.gmra.mrb[24].mxu1 %v602_v63  ;;  %v594_v12 = vmul.f32 %v2339_v5, %v2339_v5 }
  0xfc   : > { %2802 = vst [vmem:[#allocation5_spill] sm:$0xff] %v2345_v8  ;;  %v579_v9 = vmul.f32 %v2343_v7, %v2343_v7  ;;  %v2349_v10 = vpop.f32.mrb[6].mxu0  ;;  %v2351_v11 = vpop.f32.mrb[6].mxu1  ;;  %v595_v17 = vmul.f32 %v2345_v8, %v2345_v8 }
  0xfd   : > { %2803 = vst [vmem:[#allocation6_spill] sm:$0xff] %v2351_v11  ;;  %v582_v13 = vmul.f32 %v2349_v10, %v2349_v10  ;;  %v598_v14 = vmul.f32 %v2351_v11, %v2351_v11  ;;  %v2359_v15 = vpop.f32.mrb[7].mxu0  ;;  %v2361_v16 = vpop.f32.mrb[7].mxu1 }
  0xfe   : > { %2804 = vst [vmem:[#allocation7_spill] sm:$0xff] %v2361_v16  ;;  %v583_v18 = vmul.f32 %v2359_v15, %v2359_v15  ;;  %v599_v19 = vmul.f32 %v2361_v16, %v2361_v16 }
  0xff   : > { %v606_v20 = vpack.c.bf16 %v582_v13, %v578_v6  ;;  %v614_v21 = vpack.c.bf16 %v598_v14, %v594_v12 }
 0x100   : > { %v607_v22 = vpack.c.bf16 %v583_v18, %v579_v9  ;;  %v615_v23 = vpack.c.bf16 %v599_v19, %v595_v17 }
 0x102   : > { %v2369_v24 = vpop.f32.mrb[8].mxu1  ;;  %914 = vmatprep.mubr.bf16.mxu1 %v607_v22  ;;  %v2371_v25 = vpop.f32.mrb[8].mxu0 }
 0x103   : > { %v2373_v26 = vpop.f32.mrb[9].mxu1  ;;  %915 = vmatmul.mubr.bf16.gmra.mrb[28].mxu1 %v606_v20  ;;  %v2375_v27 = vpop.f32.mrb[9].mxu0  ;;  %v572_v30 = vmul.f32 %v2369_v24, %v2369_v24 }
 0x104   : > { %v2377_v28 = vpop.f32.mrb[10].mxu1  ;;  %922 = vmatprep.mubr.bf16.mxu1 %v611_v3  ;;  %v2379_v29 = vpop.f32.mrb[10].mxu0  ;;  %v573_v34 = vmul.f32 %v2373_v26, %v2373_v26 }
 0x105   : > { %v576_v31 = vmul.f32 %v2377_v28, %v2377_v28  ;;  %v2385_v32 = vpop.f32.mrb[11].mxu1  ;;  %v2387_v33 = vpop.f32.mrb[11].mxu0 }
 0x106   : > { %v577_v35 = vmul.f32 %v2385_v32, %v2385_v32 }
 0x107   : > { %v604_v36 = vpack.c.bf16 %v576_v31, %v572_v30  ;;  %v2454_v31 = vld [vmem:[%s2789_s4] ss:$16 sps:$4 sm:$0xff]  }
 0x108   : > { %v605_v37 = vpack.c.bf16 %v577_v35, %v573_v34  ;;  %v1984_v34 = vld [vmem:[%s2789_s4 + $0x4] ss:$16 sps:$4 sm:$0xff]   ;;  %v2462_v35 = vld [vmem:[%s2789_s4 + $0x8] ss:$16 sps:$4 sm:$0xff]  }
 0x109   : > { %1093 = vmatprep.subr.bf16.mxu1 %v1984_v34 }
 0x10a   : > { %v2393_v38 = vpop.f32.mrb[12].mxu1  ;;  %971 = vmatprep.mubr.bf16.mxu0 %v605_v37  ;;  %v2395_v39 = vpop.f32.mrb[12].mxu0  ;;  %1094 = vmatpush1.bf16.msra.mxu1 %v2454_v31 }
 0x10b   : > { %v2397_v40 = vpop.f32.mrb[13].mxu1  ;;  %923 = vmatmul.mubr.bf16.gmra.mrb[32].mxu1 %v610_v0  ;;  %972 = vmatmul.mubr.bf16.vlgmr.msra.gmra.mrb[16].mxu0 %v604_v36  ;;  %v2399_v41 = vpop.f32.mrb[13].mxu0  ;;  %v580_v44 = vmul.f32 %v2393_v38, %v2393_v38  ;;  %v1987_v36 = vld [vmem:[%s2789_s4 + $0xc] ss:$16 sps:$4 sm:$0xff]  }
 0x10c   : > { %v2401_v42 = vpop.f32.mrb[14].mxu1  ;;  %930 = vmatprep.mubr.bf16.mxu1 %v615_v23  ;;  %v2403_v43 = vpop.f32.mrb[14].mxu0  ;;  %v581_v49 = vmul.f32 %v2397_v40, %v2397_v40  ;;  %1166 = vmatprep.subr.bf16.mxu0 %v1987_v36 }
 0x10d   : > { %v584_v45 = vmul.f32 %v2401_v42, %v2401_v42  ;;  %v2409_v46 = vpop.f32.mrb[15].mxu1  ;;  %v2449_v30 = vpop.f32.mrb[15].mxu0  ;;  %1167 = vmatpush1.bf16.msra.mxu0 %v2462_v35  ;;  %1263 = vmatprep.subr.bf16.mxu1 %v1984_v34 }
 0x10e   : > { %v585_v52 = vmul.f32 %v2409_v46, %v2409_v46  ;;  %1336 = vmatprep.subr.bf16.mxu0 %v1987_v36 }
 0x10f   : > { %v608_v55 = vpack.c.bf16 %v584_v45, %v580_v44 }
 0x110   : > { %v609_v56 = vpack.c.bf16 %v585_v52, %v581_v49 }
 0x112   : > { %v2415_v57 = vpop.f32.mrb[16].mxu1  ;;  %979 = vmatprep.mubr.bf16.mxu0 %v609_v56 }
 0x113   : > { %v2417_v60 = vpop.f32.mrb[17].mxu1  ;;  %931 = vmatmul.mubr.bf16.gmra.mrb[36].mxu1 %v614_v21  ;;  %980 = vmatmul.mubr.bf16.gmra.mrb[20].mxu0 %v608_v55  ;;  %v588_v62 = vmul.f32 %v2415_v57, %v2415_v57 }
 0x114   : > { %v2419_v61 = vpop.f32.mrb[18].mxu1  ;;  %1125 = vmatprep.mubr.bf16.mxu1 %v2792_v2  ;;  %v589_v1 = vmul.f32 %v2417_v60, %v2417_v60 }
 0x115   : > { %v592_v63 = vmul.f32 %v2419_v61, %v2419_v61  ;;  %v2426_v0 = vpop.f32.mrb[19].mxu1 }
 0x116   : > { %v593_v3 = vmul.f32 %v2426_v0, %v2426_v0 }
 0x117   : > { %v612_v6 = vpack.c.bf16 %v592_v63, %v588_v62 }
 0x118   : > { %v613_v9 = vpack.c.bf16 %v593_v3, %v589_v1 }
 0x11a   : > { %v2432_v12 = vpop.f32.mrb[20].mxu1  ;;  %987 = vmatprep.mubr.bf16.mxu0 %v613_v9 }
 0x11b   : > { %v2434_v13 = vpop.f32.mrb[21].mxu1  ;;  %988 = vmatmul.mubr.bf16.gmra.mrb[24].mxu0 %v612_v6  ;;  %v596_v17 = vmul.f32 %v2432_v12, %v2432_v12 }
 0x11c   : > { %2805 = vst [vmem:[#allocation8_spill] sm:$0xff] %v2434_v13  ;;  %v2436_v14 = vpop.f32.mrb[22].mxu1  ;;  %v597_v20 = vmul.f32 %v2434_v13, %v2434_v13 }
 0x11d   : > { %2806 = vst [vmem:[#allocation9_spill] sm:$0xff] %v2436_v14  ;;  %v600_v18 = vmul.f32 %v2436_v14, %v2436_v14  ;;  %v2442_v19 = vpop.f32.mrb[23].mxu1 }
 0x11e   : > { %2807 = vst [vmem:[#allocation10_spill] sm:$0xff] %v2442_v19  ;;  %v601_v21 = vmul.f32 %v2442_v19, %v2442_v19 }
 0x11f   : > { %v616_v22 = vpack.c.bf16 %v600_v18, %v596_v17 }
 0x120   : > { %v617_v23 = vpack.c.bf16 %v601_v21, %v597_v20 }
 0x122   : > { %995 = vmatprep.mubr.bf16.mxu0 %v617_v23 }
 0x123   : > { %996 = vmatmul.mubr.bf16.gmra.mrb[28].mxu0 %v616_v22 }
 0x124   : > { %1198 = vmatprep.mubr.bf16.mxu0 %v2792_v2 }
 0x1ce   : > { %v1810_v37 = vpop.f32.mrb[24].mxu1 }
 0x1cf   : > { %v1811_v44 = vpop.f32.mrb[25].mxu1 }
 0x1d0   : > { %v1812_v45 = vadd.f32 %v1811_v44, %v1810_v37  ;;  %v1813_v49 = vpop.f32.mrb[26].mxu1 }
 0x1d1   : > { %v1814_v52 = vpop.f32.mrb[27].mxu1 }
 0x1d2   : > { %v1815_v55 = vadd.f32 %v1814_v52, %v1813_v49  ;;  %v1012_v49 = vmul.f32 %v2375_v27, %v2375_v27 }
 0x1d6   : > { %v1816_v56 = vpop.f32.mrb[28].mxu1 }
 0x1d7   : > { %v1817_v62 = vpop.f32.mrb[29].mxu1 }
 0x1d8   : > { %v1818_v63 = vadd.f32 %v1817_v62, %v1816_v56  ;;  %v1819_v1 = vpop.f32.mrb[30].mxu1  ;;  %v1013_v62 = vmul.f32 %v2387_v33, %v2387_v33 }
 0x1d9   : > { %v1820_v3 = vpop.f32.mrb[31].mxu1 }
 0x1da   : > { %v1821_v6 = vadd.f32 %v1820_v3, %v1819_v1 }
 0x1de   : > { %v1822_v9 = vpop.f32.mrb[32].mxu1  ;;  %v1850_v17 = vpop.f32.mrb[16].mxu0 }
 0x1df   : > { %v1823_v18 = vpop.f32.mrb[33].mxu1  ;;  %v1851_v20 = vpop.f32.mrb[17].mxu0 }
 0x1e0   : > { %v1824_v21 = vadd.f32 %v1823_v18, %v1822_v9  ;;  %v1852_v22 = vadd.f32 %v1851_v20, %v1850_v17  ;;  %v1825_v23 = vpop.f32.mrb[34].mxu1  ;;  %v1853_v34 = vpop.f32.mrb[18].mxu0 }
 0x1e1   : > { %v1826_v36 = vpop.f32.mrb[35].mxu1  ;;  %v1854_v2 = vpop.f32.mrb[19].mxu0 }
 0x1e2   : > { %v974_v37 = vadd.f32 %v1852_v22, %v1812_v45  ;;  %v1827_v44 = vadd.f32 %v1826_v36, %v1825_v23  ;;  %v1855_v19 = vadd.f32 %v1854_v2, %v1853_v34 }
 0x1e4   : > { %v1004_v52 = vmul.f32 0.03125, %v974_v37  ;;  %v977_v56 = vadd.f32 %v1855_v19, %v1815_v55 }
 0x1e6   : > { %v1020_v1 = vsub.f32 %v1004_v52, %v1012_v49  ;;  %v1005_v3 = vmul.f32 0.03125, %v977_v56  ;;  %v1828_v16 = vpop.f32.mrb[36].mxu1  ;;  %v1856_v9 = vpop.f32.mrb[20].mxu0  ;;  %v1014_v49 = vmul.f32 %v2371_v25, %v2371_v25 }
 0x1e7   : > { %v1829_v17 = vpop.f32.mrb[37].mxu1  ;;  %v1857_v18 = vpop.f32.mrb[21].mxu0 }
 0x1e8   : > { %v1028_v20 = vmax.f32 %v1020_v1, 0.0  ;;  %v1021_v14 = vsub.f32 %v1005_v3, %v1013_v62  ;;  %v1830_v11 = vadd.f32 %v1829_v17, %v1828_v16  ;;  %v1858_v45 = vadd.f32 %v1857_v18, %v1856_v9  ;;  %v1831_v22 = vpop.f32.mrb[38].mxu1  ;;  %v1859_v2 = vpop.f32.mrb[22].mxu0 }
 0x1e9   : > { %v1832_v23 = vpop.f32.mrb[39].mxu1  ;;  %v1860_v34 = vpop.f32.mrb[23].mxu0  ;;  %v1015_v1 = vmul.f32 %v2379_v29, %v2379_v29 }
 0x1ea   : > { %v1036_v36 = vadd.f32 1e-05, %v1028_v20  ;;  %v1029_v37 = vmax.f32 %v1021_v14, 0.0  ;;  %v982_v19 = vadd.f32 %v1858_v45, %v1818_v63  ;;  %v1833_v55 = vadd.f32 %v1832_v23, %v1831_v22 }
 0x1eb   : > { %v1861_v13 = vadd.f32 %v1860_v34, %v1859_v2 }
 0x1ec   : > { %1988 = vrsqrt.f32 %v1036_v36  ;;  %v1037_v52 = vadd.f32 1e-05, %v1029_v37  ;;  %v1006_v56 = vmul.f32 0.03125, %v982_v19 }
 0x1ed   : > { %v985_v8 = vadd.f32 %v1861_v13, %v1821_v6  ;;  %v1016_v13 = vmul.f32 %v2399_v41, %v2399_v41 }
 0x1ee   : > { %1990 = vrsqrt.f32 %v1037_v52  ;;  %v1022_v62 = vsub.f32 %v1006_v56, %v1014_v49  ;;  %v1862_v16 = vpop.f32.mrb[24].mxu0 }
 0x1ef   : > { %v1007_v3 = vmul.f32 0.03125, %v985_v8  ;;  %v1863_v9 = vpop.f32.mrb[25].mxu0  ;;  %v1017_v8 = vmul.f32 %v2449_v30, %v2449_v30 }
 0x1f0   : > { %v1030_v17 = vmax.f32 %v1022_v62, 0.0  ;;  %v1864_v14 = vadd.f32 %v1863_v9, %v1862_v16  ;;  %v1865_v63 = vpop.f32.mrb[26].mxu0 }
 0x1f1   : > { %v1023_v18 = vsub.f32 %v1007_v3, %v1015_v1  ;;  %v1866_v20 = vpop.f32.mrb[27].mxu0 }
 0x1f2   : > { %v1038_v45 = vadd.f32 1e-05, %v1030_v17  ;;  %v990_v22 = vadd.f32 %v1864_v14, %v1824_v21  ;;  %v1867_v2 = vadd.f32 %v1866_v20, %v1865_v63 }
 0x1f3   : > { %v1031_v23 = vmax.f32 %v1023_v18, 0.0 }
 0x1f4   : > { %1992 = vrsqrt.f32 %v1038_v45  ;;  %v1008_v6 = vmul.f32 0.03125, %v990_v22  ;;  %v993_v34 = vadd.f32 %v1867_v2, %v1827_v44  ;;  %v1018_v22 = vmul.f32 %v2395_v39, %v2395_v39 }
 0x1f5   : > { %v1039_v36 = vadd.f32 1e-05, %v1031_v23 }
 0x1f6   : > { %v1989_v37 = vpop.eup %1988  ;;  %v1024_v19 = vsub.f32 %v1008_v6, %v1016_v13  ;;  %v1009_v49 = vmul.f32 0.03125, %v993_v34  ;;  %v1868_v52 = vpop.f32.mrb[28].mxu0  ;;  %v1019_v6 = vmul.f32 %v2403_v43, %v2403_v43 }
 0x1f7   : > { %v1239_v56 = vmul.f32 %v1989_v37, %v2375_v27  ;;  %1994 = vrsqrt.f32 %v1039_v36  ;;  %v1869_v21 = vpop.f32.mrb[29].mxu0 }
 0x1f8   : > { %v1991_v62 = vpop.eup %1990  ;;  %v1032_v16 = vmax.f32 %v1024_v19, 0.0  ;;  %v1025_v1 = vsub.f32 %v1009_v49, %v1017_v8  ;;  %v1870_v3 = vadd.f32 %v1869_v21, %v1868_v52  ;;  %v1871_v9 = vpop.f32.mrb[30].mxu0 }
 0x1f9   : > { %v1240_v44 = vmul.f32 %v1991_v62, %v2387_v33  ;;  %v1872_v17 = vpop.f32.mrb[31].mxu0  ;;  %v1052_v14 = vpack.c.bf16 %v1991_v62, %v1989_v37  ;;  %v2808_v33 = vmov 0  }
 0x1fa   : > { %v1040_v63 = vadd.f32 1e-05, %v1032_v16  ;;  %v1033_v18 = vmax.f32 %v1025_v1, 0.0  ;;  %v998_v20 = vadd.f32 %v1870_v3, %v1830_v11  ;;  %v1873_v45 = vadd.f32 %v1872_v17, %v1871_v9 }
 0x1fb   : > { %1740 = vmatmul.mubr.msk.bf16.vlgmr.msra.gmra.mrb[40].mxu1 %vm1080_vm1, %v1052_v14  ;;  %1744 = vmatmul.mubr.msk.bf16.vlgmr.msra.gmra.mrb[32].mxu0 %vm1080_vm1, %v1052_v14  ;;  %v1247_v27 = vpack.c.bf16 %v1240_v44, %v1239_v56 }
 0x1fc   : > { %1996 = vrsqrt.f32 %v1040_v63  ;;  %v1041_v2 = vadd.f32 1e-05, %v1033_v18  ;;  %v1010_v23 = vmul.f32 0.03125, %v998_v20  ;;  %v1001_v13 = vadd.f32 %v1873_v45, %v1833_v55  ;;  %1264 = vmatpush1.bf16.msra.mxu1 %v2454_v31  ;;  %1337 = vmatpush1.bf16.msra.mxu0 %v2462_v35 }
 0x1fd   : > { %1135 = vmatprep.mubr.bf16.mxu1 %v2808_v33  ;;  %1208 = vmatprep.mubr.bf16.mxu0 %v2808_v33 }
 0x1fe   : > { %v1993_v11 = vpop.eup %1992  ;;  %1998 = vrsqrt.f32 %v1041_v2  ;;  %v1026_v34 = vsub.f32 %v1010_v23, %v1018_v22  ;;  %v1011_v36 = vmul.f32 0.03125, %v1001_v13 }
 0x1ff   : > { %v1241_v37 = vmul.f32 %v1993_v11, %v2371_v25 }
 0x200   : > { %v1034_v8 = vmax.f32 %v1026_v34, 0.0  ;;  %v1027_v19 = vsub.f32 %v1011_v36, %v1019_v6 }
 0x201   : > { %v1995_v55 = vpop.eup %1994 }
 0x202   : > { %v1042_v49 = vadd.f32 1e-05, %v1034_v8  ;;  %v1035_v31 = vmax.f32 %v1027_v19, 0.0  ;;  %v1053_v52 = vpack.c.bf16 %v1995_v55, %v1993_v11  ;;  %v1242_v35 = vmul.f32 %v1995_v55, %v2379_v29 }
 0x204   : > { %2000 = vrsqrt.f32 %v1042_v49  ;;  %v1043_v56 = vadd.f32 1e-05, %v1035_v31  ;;  %1741 = vmatmul.mubr.msk.bf16.gmra.mrb[44].mxu1 %vm1080_vm1, %v1053_v52  ;;  %1745 = vmatmul.mubr.msk.bf16.gmra.mrb[36].mxu0 %vm1080_vm1, %v1053_v52  ;;  %v1248_v21 = vpack.c.bf16 %v1242_v35, %v1241_v37 }
 0x205   : > { %1145 = vmatprep.mubr.bf16.mxu1 %v2808_v33  ;;  %1218 = vmatprep.mubr.bf16.mxu0 %v2808_v33 }
 0x206   : > { %v1997_v25 = vpop.eup %1996  ;;  %2002 = vrsqrt.f32 %v1043_v56 }
 0x207   : > { %v1243_v62 = vmul.f32 %v1997_v25, %v2399_v41 }
 0x208   : > { %v1999_v16 = vpop.eup %1998 }
 0x209   : > { %v1054_v1 = vpack.c.bf16 %v1999_v16, %v1997_v25  ;;  %v1244_v3 = vmul.f32 %v1999_v16, %v2449_v30 }
 0x20b   : > { %v1249_v29 = vpack.c.bf16 %v1244_v3, %v1243_v62 }
 0x20c   : > { %1742 = vmatmul.mubr.msk.bf16.gmra.mrb[48].mxu1 %vm1080_vm1, %v1054_v1  ;;  %1746 = vmatmul.mubr.msk.bf16.gmra.mrb[40].mxu0 %vm1080_vm1, %v1054_v1 }
 0x20d   : > { %1155 = vmatprep.mubr.bf16.mxu1 %v2808_v33  ;;  %1228 = vmatprep.mubr.bf16.mxu0 %v2808_v33 }
 0x20e   : > { %v2001_v9 = vpop.eup %2000 }
 0x20f   : > { %v1245_v44 = vmul.f32 %v2001_v9, %v2395_v39 }
 0x210   : > { %v2003_v17 = vpop.eup %2002 }
 0x211   : > { %v1055_v14 = vpack.c.bf16 %v2003_v17, %v2001_v9  ;;  %v1246_v41 = vmul.f32 %v2003_v17, %v2403_v43  ;;  %v2809_v17 = vld [vmem:[#allocation5_spill] sm:$0xff] }
 0x213   : > { %v1250_v63 = vpack.c.bf16 %v1246_v41, %v1245_v44 }
 0x214   : > { %1743 = vmatmul.mubr.msk.bf16.gmra.mrb[52].mxu1 %vm1080_vm1, %v1055_v14  ;;  %1747 = vmatmul.mubr.msk.bf16.gmra.mrb[44].mxu0 %vm1080_vm1, %v1055_v14 }
 0x215   : > { %1295 = vmatprep.mubr.bf16.mxu1 %v2808_v33  ;;  %1368 = vmatprep.mubr.bf16.mxu0 %v2808_v33 }
 0x21c   : > { %1748 = vmatmul.mubr.msk.bf16.vlgmr.msra.gmra.mrb[56].mxu1 %vm1080_vm1, %v1247_v27  ;;  %1752 = vmatmul.mubr.msk.bf16.vlgmr.msra.gmra.mrb[48].mxu0 %vm1080_vm1, %v1247_v27 }
 0x21d   : > { %1305 = vmatprep.mubr.bf16.mxu1 %v2808_v33  ;;  %1378 = vmatprep.mubr.bf16.mxu0 %v2808_v33 }
 0x224   : > { %1749 = vmatmul.mubr.msk.bf16.gmra.mrb[60].mxu1 %vm1080_vm1, %v1248_v21  ;;  %1753 = vmatmul.mubr.msk.bf16.gmra.mrb[52].mxu0 %vm1080_vm1, %v1248_v21 }
 0x225   : > { %1315 = vmatprep.mubr.bf16.mxu1 %v2808_v33  ;;  %1388 = vmatprep.mubr.bf16.mxu0 %v2808_v33 }
 0x22c   : > { %1750 = vmatmul.mubr.msk.bf16.gmra.mrb[64].mxu1 %vm1080_vm1, %v1249_v29  ;;  %1754 = vmatmul.mubr.msk.bf16.gmra.mrb[56].mxu0 %vm1080_vm1, %v1249_v29 }
 0x22d   : > { %1325 = vmatprep.mubr.bf16.mxu1 %v2808_v33  ;;  %1398 = vmatprep.mubr.bf16.mxu0 %v2808_v33 }
 0x234   : > { %1751 = vmatmul.mubr.msk.bf16.gmra.mrb[68].mxu1 %vm1080_vm1, %v1250_v63  ;;  %1755 = vmatmul.mubr.msk.bf16.gmra.mrb[60].mxu0 %vm1080_vm1, %v1250_v63 }
 0x2ce   : > { %v1127_v39 = vpop.f32.mrb[40].mxu1  ;;  %v1200_v43 = vpop.f32.mrb[32].mxu0 }
 0x2cf   : > { %v2526_v30 = vmul.f32 %v1127_v39, %v2305_v47  ;;  %v2529_v18 = vmul.f32 %v1200_v43, %v2369_v24  ;;  %v1129_v20 = vpop.f32.mrb[41].mxu1  ;;  %v1202_v45 = vpop.f32.mrb[33].mxu0  ;;  %v2811_v39 = vld [vmem:[#allocation6_spill] sm:$0xff] }
 0x2d0   : > { %v2532_v22 = vmul.f32 %v1129_v20, %v2311_v50  ;;  %v2535_v27 = vmul.f32 %v1202_v45, %v2373_v26  ;;  %v1131_v2 = vpop.f32.mrb[42].mxu1  ;;  %v1204_v23 = vpop.f32.mrb[34].mxu0  ;;  %v2812_v20 = vld [vmem:[#allocation9_spill] sm:$0xff] }
 0x2d1   : > { %v2538_v13 = vmul.f32 %v1131_v2, %v2317_v53  ;;  %v2541_v33 = vmul.f32 %v1204_v23, %v2377_v28  ;;  %v1133_v47 = vpop.f32.mrb[43].mxu1  ;;  %v1206_v11 = vpop.f32.mrb[35].mxu0 }
 0x2d2   : > { %v2544_v24 = vmul.f32 %v1133_v47, %v2327_v58  ;;  %v2547_v6 = vmul.f32 %v1206_v11, %v2385_v32  ;;  %v2813_v47 = vld [vmem:[#allocation7_spill] sm:$0xff] }
 0x2d7   : > { %v1137_v50 = vpop.f32.mrb[44].mxu1  ;;  %v1210_v34 = vpop.f32.mrb[36].mxu0 }
 0x2d8   : > { %v2550_v26 = vmul.f32 %v1137_v50, %v2337_v4  ;;  %v2553_v36 = vmul.f32 %v1210_v34, %v2393_v38  ;;  %v1139_v53 = vpop.f32.mrb[45].mxu1  ;;  %v1212_v37 = vpop.f32.mrb[37].mxu0  ;;  %v2814_v50 = vld [vmem:[#allocation10_spill] sm:$0xff] }
 0x2d9   : > { %v2556_v28 = vmul.f32 %v1139_v53, %v2343_v7  ;;  %v2559_v8 = vmul.f32 %v1212_v37, %v2397_v40  ;;  %v1141_v58 = vpop.f32.mrb[46].mxu1  ;;  %v1214_v19 = vpop.f32.mrb[38].mxu0  ;;  %v1473_v53 = vld [vmem:[%s2790_s5] sm:$0xf] }
 0x2da   : > { %v2562_v32 = vmul.f32 %v1141_v58, %v2349_v10  ;;  %v2565_v55 = vmul.f32 %v1214_v19, %v2401_v42  ;;  %v1143_v4 = vpop.f32.mrb[47].mxu1  ;;  %v1216_v49 = vpop.f32.mrb[39].mxu0 }
 0x2db   : > { %v2568_v38 = vmul.f32 %v1143_v4, %v2359_v15  ;;  %v2571_v31 = vmul.f32 %v1216_v49, %v2409_v46 }
 0x2df   : > { %v1147_v7 = vpop.f32.mrb[48].mxu1  ;;  %v1220_v52 = vpop.f32.mrb[40].mxu0 }
 0x2e0   : > { %v2574_v40 = vmul.f32 %v1147_v7, %v2307_v48  ;;  %v2577_v35 = vmul.f32 %v1220_v52, %v2415_v57  ;;  %v1149_v10 = vpop.f32.mrb[49].mxu1  ;;  %v1222_v56 = vpop.f32.mrb[41].mxu0  ;;  %v1475_v57 = vlaneseq }
 0x2e1   : > { %v2580_v42 = vmul.f32 %v1149_v10, %v2313_v51  ;;  %v2583_v21 = vmul.f32 %v1222_v56, %v2417_v60  ;;  %v1151_v15 = vpop.f32.mrb[50].mxu1  ;;  %v1224_v25 = vpop.f32.mrb[42].mxu0 }
 0x2e2   : > { %v2586_v46 = vmul.f32 %v1151_v15, %v2319_v54  ;;  %v2589_v62 = vmul.f32 %v1224_v25, %v2419_v61  ;;  %v1153_v48 = vpop.f32.mrb[51].mxu1  ;;  %v1226_v16 = vpop.f32.mrb[43].mxu0  ;;  %v1476_v3 = vshrl.u32 %v1475_v57, 7 }
 0x2e3   : > { %v2592_v1 = vmul.f32 %v1153_v48, %v2329_v59  ;;  %v2595_v51 = vmul.f32 %v1226_v16, %v2426_v0  ;;  %v2810_v59 = vld [vmem:[#allocation8_spill] sm:$0xff] }
 0x2e4   : > { %v1477_v2 = vsub.s32 0, %v1476_v3  ;;  %v1485_v23 = vsub.s32 2, %v1476_v3  ;;  %v1481_v37 = vsub.s32 1, %v1476_v3  ;;  %v1489_v58 = vsub.s32 3, %v1476_v3 }
 0x2e6   : > { %v2625_v19 = vrot.slane %v1473_v53, %v1477_v2  ;;  %v2627_v4 = vrot.slane %v1473_v53, %v1485_v23  ;;  %v2629_v52 = vrot.slane %v1473_v53, %v1481_v37  ;;  %v2631_v10 = vrot.slane %v1473_v53, %v1489_v58 }
 0x2e7   : > { %v1157_v60 = vpop.f32.mrb[52].mxu1  ;;  %v1230_v29 = vpop.f32.mrb[44].mxu0 }
 0x2e8   : > { %v2598_v9 = vmul.f32 %v1157_v60, %v2339_v5  ;;  %v2601_v54 = vmul.f32 %v1230_v29, %v2432_v12  ;;  %v1159_v61 = vpop.f32.mrb[53].mxu1  ;;  %v1232_v44 = vpop.f32.mrb[45].mxu0 }
 0x2e9   : > { %v2604_v14 = vmul.f32 %v1159_v61, %v2809_v17  ;;  %v2607_v41 = vmul.f32 %v1232_v44, %v2810_v59  ;;  %v1161_v0 = vpop.f32.mrb[54].mxu1  ;;  %v1234_v63 = vpop.f32.mrb[46].mxu0 }
 0x2ea   : > { %v2610_v43 = vmul.f32 %v1161_v0, %v2811_v39  ;;  %v2613_v5 = vmul.f32 %v1234_v63, %v2812_v20  ;;  %v1163_v45 = vpop.f32.mrb[55].mxu1  ;;  %v1236_v12 = vpop.f32.mrb[47].mxu0 }
 0x2eb   : > { %v2616_v11 = vmul.f32 %v1163_v45, %v2813_v47  ;;  %v2619_v34 = vmul.f32 %v1236_v12, %v2814_v50 }
 0x2ef   : > { %v1297_v49 = vpop.f32.mrb[56].mxu1  ;;  %v1370_v7 = vpop.f32.mrb[48].mxu0 }
 0x2f0   : > { %v1441_v56 = vsub.f32 %v2526_v30, %v1297_v49  ;;  %v1443_v15 = vsub.f32 %v2529_v18, %v1370_v7  ;;  %v1299_v25 = vpop.f32.mrb[57].mxu1  ;;  %v1372_v48 = vpop.f32.mrb[49].mxu0 }
 0x2f1   : > { %v1442_v16 = vsub.f32 %v2532_v22, %v1299_v25  ;;  %v1444_v57 = vsub.f32 %v2535_v27, %v1372_v48  ;;  %v1301_v3 = vpop.f32.mrb[58].mxu1  ;;  %v1374_v60 = vpop.f32.mrb[50].mxu0 }
 0x2f2   : > { %v1495_v29 = vadd.f32 %v2625_v19, %v1441_v56  ;;  %v1497_v61 = vadd.f32 %v2627_v4, %v1443_v15  ;;  %v1445_v44 = vsub.f32 %v2538_v13, %v1301_v3  ;;  %v1447_v17 = vsub.f32 %v2541_v33, %v1374_v60  ;;  %v1303_v59 = vpop.f32.mrb[59].mxu1  ;;  %v1376_v30 = vpop.f32.mrb[51].mxu0 }
 0x2f3   : > { %v1496_v18 = vadd.f32 %v2629_v52, %v1442_v16  ;;  %v1498_v0 = vadd.f32 %v2631_v10, %v1444_v57  ;;  %v1446_v22 = vsub.f32 %v2544_v24, %v1303_v59  ;;  %v1448_v27 = vsub.f32 %v2547_v6, %v1376_v30 }
 0x2f4   : > { %v1527_v63 = vpack.c.bf16 %v1495_v29, %v1495_v29  ;;  %v1560_v39 = vpack.c.bf16 %v1497_v61, %v1497_v61  ;;  %v1499_v20 = vadd.f32 %v2625_v19, %v1445_v44  ;;  %v1501_v45 = vadd.f32 %v2627_v4, %v1447_v17 }
 0x2f5   : > { %v1543_v12 = vpack.c.bf16 %v1496_v18, %v1496_v18  ;;  %v1577_v13 = vpack.c.bf16 %v1498_v0, %v1498_v0  ;;  %v1500_v33 = vadd.f32 %v2629_v52, %v1446_v22  ;;  %v1502_v2 = vadd.f32 %v2631_v10, %v1448_v27 }
 0x2f6   : > { %1535 = vst [vmem:[%s2651_s20] sm:$0xf] %v1527_v63  ;;  %1764 = vst [vmem:[%s2651_s20 + $0x8] sm:$0xf] %v1560_v39  ;;  %v1528_v24 = vpack.c.bf16 %v1499_v20, %v1499_v20  ;;  %v1561_v6 = vpack.c.bf16 %v1501_v45, %v1501_v45 }
 0x2f7   : > { %1756 = vst [vmem:[%s2651_s20 + $0x4] sm:$0xf] %v1543_v12  ;;  %1772 = vst [vmem:[%s2651_s20 + $0xc] sm:$0xf] %v1577_v13  ;;  %v1544_v23 = vpack.c.bf16 %v1500_v33, %v1500_v33  ;;  %v1578_v47 = vpack.c.bf16 %v1502_v2, %v1502_v2  ;;  %v1307_v50 = vpop.f32.mrb[60].mxu1  ;;  %v1380_v53 = vpop.f32.mrb[52].mxu0 }
 0x2f8   : > { %1536 = vst [vmem:[%s2651_s20 + $0x10] sm:$0xf] %v1528_v24  ;;  %1765 = vst [vmem:[%s2651_s20 + $0x18] sm:$0xf] %v1561_v6  ;;  %v1449_v37 = vsub.f32 %v2550_v26, %v1307_v50  ;;  %v1451_v58 = vsub.f32 %v2553_v36, %v1380_v53  ;;  %v1309_v49 = vpop.f32.mrb[61].mxu1  ;;  %v1382_v7 = vpop.f32.mrb[53].mxu0 }
 0x2f9   : > { %1757 = vst [vmem:[%s2651_s20 + $0x14] sm:$0xf] %v1544_v23  ;;  %1773 = vst [vmem:[%s2651_s20 + $0x1c] sm:$0xf] %v1578_v47  ;;  %v1450_v56 = vsub.f32 %v2556_v28, %v1309_v49  ;;  %v1452_v15 = vsub.f32 %v2559_v8, %v1382_v7  ;;  %v1311_v25 = vpop.f32.mrb[62].mxu1  ;;  %v1384_v48 = vpop.f32.mrb[54].mxu0 }
 0x2fa   : > { %v1503_v16 = vadd.f32 %v2625_v19, %v1449_v37  ;;  %v1505_v57 = vadd.f32 %v2627_v4, %v1451_v58  ;;  %v1453_v3 = vsub.f32 %v2562_v32, %v1311_v25  ;;  %v1455_v26 = vsub.f32 %v2565_v55, %v1384_v48  ;;  %v1313_v36 = vpop.f32.mrb[63].mxu1  ;;  %v1386_v60 = vpop.f32.mrb[55].mxu0 }
 0x2fb   : > { %v1504_v29 = vadd.f32 %v2629_v52, %v1450_v56  ;;  %v1506_v28 = vadd.f32 %v2631_v10, %v1452_v15  ;;  %v1454_v8 = vsub.f32 %v2568_v38, %v1313_v36  ;;  %v1456_v61 = vsub.f32 %v2571_v31, %v1386_v60 }
 0x2fc   : > { %v1529_v44 = vpack.c.bf16 %v1503_v16, %v1503_v16  ;;  %v1562_v17 = vpack.c.bf16 %v1505_v57, %v1505_v57  ;;  %v1507_v32 = vadd.f32 %v2625_v19, %v1453_v3  ;;  %v1509_v55 = vadd.f32 %v2627_v4, %v1455_v26 }
 0x2fd   : > { %v1545_v59 = vpack.c.bf16 %v1504_v29, %v1504_v29  ;;  %v1579_v30 = vpack.c.bf16 %v1506_v28, %v1506_v28  ;;  %v1508_v18 = vadd.f32 %v2629_v52, %v1454_v8  ;;  %v1510_v0 = vadd.f32 %v2631_v10, %v1456_v61 }
 0x2fe   : > { %1537 = vst [vmem:[%s2651_s20 + $0x20] sm:$0xf] %v1529_v44  ;;  %1766 = vst [vmem:[%s2651_s20 + $0x28] sm:$0xf] %v1562_v17  ;;  %v1530_v38 = vpack.c.bf16 %v1507_v32, %v1507_v32  ;;  %v1563_v31 = vpack.c.bf16 %v1509_v55, %v1509_v55 }
 0x2ff   : > { %1758 = vst [vmem:[%s2651_s20 + $0x24] sm:$0xf] %v1545_v59  ;;  %1774 = vst [vmem:[%s2651_s20 + $0x2c] sm:$0xf] %v1579_v30  ;;  %v1546_v22 = vpack.c.bf16 %v1508_v18, %v1508_v18  ;;  %v1580_v27 = vpack.c.bf16 %v1510_v0, %v1510_v0  ;;  %v1317_v63 = vpop.f32.mrb[64].mxu1  ;;  %v1390_v39 = vpop.f32.mrb[56].mxu0 }
 0x300   : > { %1538 = vst [vmem:[%s2651_s20 + $0x30] sm:$0xf] %v1530_v38  ;;  %1767 = vst [vmem:[%s2651_s20 + $0x38] sm:$0xf] %v1563_v31  ;;  %v1457_v20 = vsub.f32 %v2574_v40, %v1317_v63  ;;  %v1459_v45 = vsub.f32 %v2577_v35, %v1390_v39  ;;  %v1319_v12 = vpop.f32.mrb[65].mxu1  ;;  %v1392_v13 = vpop.f32.mrb[57].mxu0 }
 0x301   : > { %1759 = vst [vmem:[%s2651_s20 + $0x34] sm:$0xf] %v1546_v22  ;;  %1775 = vst [vmem:[%s2651_s20 + $0x3c] sm:$0xf] %v1580_v27  ;;  %v1458_v33 = vsub.f32 %v2580_v42, %v1319_v12  ;;  %v1460_v2 = vsub.f32 %v2583_v21, %v1392_v13  ;;  %v1321_v24 = vpop.f32.mrb[66].mxu1  ;;  %v1394_v6 = vpop.f32.mrb[58].mxu0 }
 0x302   : > { %v1511_v23 = vadd.f32 %v2625_v19, %v1457_v20  ;;  %v1513_v47 = vadd.f32 %v2627_v4, %v1459_v45  ;;  %v1461_v50 = vsub.f32 %v2586_v46, %v1321_v24  ;;  %v1463_v40 = vsub.f32 %v2589_v62, %v1394_v6  ;;  %v1323_v35 = vpop.f32.mrb[67].mxu1  ;;  %v1396_v53 = vpop.f32.mrb[59].mxu0 }
 0x303   : > { %v1512_v37 = vadd.f32 %v2629_v52, %v1458_v33  ;;  %v1514_v42 = vadd.f32 %v2631_v10, %v1460_v2  ;;  %v1462_v21 = vsub.f32 %v2592_v1, %v1323_v35  ;;  %v1464_v58 = vsub.f32 %v2595_v51, %v1396_v53 }
 0x304   : > { %v1531_v49 = vpack.c.bf16 %v1511_v23, %v1511_v23  ;;  %v1564_v7 = vpack.c.bf16 %v1513_v47, %v1513_v47  ;;  %v1515_v46 = vadd.f32 %v2625_v19, %v1461_v50  ;;  %v1517_v62 = vadd.f32 %v2627_v4, %v1463_v40 }
 0x305   : > { %v1547_v56 = vpack.c.bf16 %v1512_v37, %v1512_v37  ;;  %v1581_v15 = vpack.c.bf16 %v1514_v42, %v1514_v42  ;;  %v1516_v25 = vadd.f32 %v2629_v52, %v1462_v21  ;;  %v1518_v48 = vadd.f32 %v2631_v10, %v1464_v58 }
 0x306   : > { %1539 = vst [vmem:[%s2651_s20 + $0x40] sm:$0xf] %v1531_v49  ;;  %1768 = vst [vmem:[%s2651_s20 + $0x48] sm:$0xf] %v1564_v7  ;;  %v1532_v1 = vpack.c.bf16 %v1515_v46, %v1515_v46  ;;  %v1565_v51 = vpack.c.bf16 %v1517_v62, %v1517_v62 }
 0x307   : > { %1760 = vst [vmem:[%s2651_s20 + $0x44] sm:$0xf] %v1547_v56  ;;  %1776 = vst [vmem:[%s2651_s20 + $0x4c] sm:$0xf] %v1581_v15  ;;  %v1548_v16 = vpack.c.bf16 %v1516_v25, %v1516_v25  ;;  %v1582_v57 = vpack.c.bf16 %v1518_v48, %v1518_v48  ;;  %v1327_v3 = vpop.f32.mrb[68].mxu1  ;;  %v1400_v26 = vpop.f32.mrb[60].mxu0 }
 0x308   : > { %1540 = vst [vmem:[%s2651_s20 + $0x50] sm:$0xf] %v1532_v1  ;;  %1769 = vst [vmem:[%s2651_s20 + $0x58] sm:$0xf] %v1565_v51  ;;  %v1465_v36 = vsub.f32 %v2598_v9, %v1327_v3  ;;  %v1467_v60 = vsub.f32 %v2601_v54, %v1400_v26  ;;  %v1329_v29 = vpop.f32.mrb[69].mxu1  ;;  %v1402_v28 = vpop.f32.mrb[61].mxu0 }
 0x309   : > { %1761 = vst [vmem:[%s2651_s20 + $0x54] sm:$0xf] %v1548_v16  ;;  %1777 = vst [vmem:[%s2651_s20 + $0x5c] sm:$0xf] %v1582_v57  ;;  %v1466_v8 = vsub.f32 %v2604_v14, %v1329_v29  ;;  %v1468_v61 = vsub.f32 %v2607_v41, %v1402_v28  ;;  %v1331_v44 = vpop.f32.mrb[70].mxu1  ;;  %v1404_v17 = vpop.f32.mrb[62].mxu0 }
 0x30a   : > { %v1519_v32 = vadd.f32 %v2625_v19, %v1465_v36  ;;  %v1521_v55 = vadd.f32 %v2627_v4, %v1467_v60  ;;  %v1469_v9 = vsub.f32 %v2610_v43, %v1331_v44  ;;  %v1471_v54 = vsub.f32 %v2613_v5, %v1404_v17  ;;  %v1333_v59 = vpop.f32.mrb[71].mxu1  ;;  %v1406_v30 = vpop.f32.mrb[63].mxu0 }
 0x30b   : > { %v1520_v18 = vadd.f32 %v2629_v52, %v1466_v8  ;;  %v1522_v14 = vadd.f32 %v2631_v10, %v1468_v61  ;;  %v1470_v41 = vsub.f32 %v2616_v11, %v1333_v59  ;;  %v1472_v0 = vsub.f32 %v2619_v34, %v1406_v30 }
 0x30c   : > { %v1533_v38 = vpack.c.bf16 %v1519_v32, %v1519_v32  ;;  %v1566_v43 = vpack.c.bf16 %v1521_v55, %v1521_v55  ;;  %v1523_v5 = vadd.f32 %v2625_v19, %v1469_v9  ;;  %v1525_v31 = vadd.f32 %v2627_v4, %v1471_v54 }
 0x30d   : > { %v1549_v22 = vpack.c.bf16 %v1520_v18, %v1520_v18  ;;  %v1583_v27 = vpack.c.bf16 %v1522_v14, %v1522_v14  ;;  %v1524_v11 = vadd.f32 %v2629_v52, %v1470_v41  ;;  %v1526_v34 = vadd.f32 %v2631_v10, %v1472_v0 }
 0x30e   : > { %1541 = vst [vmem:[%s2651_s20 + $0x60] sm:$0xf] %v1533_v38  ;;  %1770 = vst [vmem:[%s2651_s20 + $0x68] sm:$0xf] %v1566_v43  ;;  %v1534_v63 = vpack.c.bf16 %v1523_v5, %v1523_v5  ;;  %v1567_v39 = vpack.c.bf16 %v1525_v31, %v1525_v31 }
 0x30f   : > { %1762 = vst [vmem:[%s2651_s20 + $0x64] sm:$0xf] %v1549_v22  ;;  %1778 = vst [vmem:[%s2651_s20 + $0x6c] sm:$0xf] %v1583_v27  ;;  %v1550_v19 = vpack.c.bf16 %v1524_v11, %v1524_v11  ;;  %v1584_v4 = vpack.c.bf16 %v1526_v34, %v1526_v34 }
 0x310   : > { %1542 = vst [vmem:[%s2651_s20 + $0x70] sm:$0xf] %v1534_v63  ;;  %1771 = vst [vmem:[%s2651_s20 + $0x78] sm:$0xf] %v1567_v39 }
 0x311   : > { %1763 = vst [vmem:[%s2651_s20 + $0x74] sm:$0xf] %v1550_v19  ;;  %1779 = vst [vmem:[%s2651_s20 + $0x7c] sm:$0xf] %v1584_v4 }
 0x312   : > { %2017 = shalt.err (!%p2014_p3)
}
 0x313   : > { %s2018_s15 = scalar_lea.hbm %s2732_s9, 2048  ;;  %s2022_s18 = scalar_lea.hbm %s2791_s6, 4096 }
 0x314   : > { %p2019_p4 = scmp.ne.s32.totalorder %s2732_s9, %s2018_s15  ;;  %p2023_p9 = scmp.lt.u32.totalorder %s2732_s9, %s2791_s6 }
 0x315   : > { %p2024_p10 = scmp.lt.u32.totalorder %s2022_s18, %s2018_s15  ;;  %p2026_p12 = scmp.lt.u32.totalorder %s2018_s15, %s2732_s9 }
 0x316   : > { %p2020_p7 = pnand %p2019_p4, %p2145_p5 }
 0x317   : > { %p2025_p11 = por %p2024_p10, %p2023_p9 }
 0x318   : > { %p2021_p8 = pneg %p2020_p7 }
 0x319   : > { %p2027_p13 = por %p2026_p12, %p2025_p11 }
 0x31b   : > { %p2028_p0 = pnand %p2027_p13, %p2021_p8 }
 0x31d   : > { %2031 = shalt.err (!%p2028_p0)
}
 0x31e   : > { %s2070_s26 = smov 64   ;;  %s2071_s25 = smov 4  }
 0x31f   : > { %1890 = dma.vmem_to_hbm [thread:$0]  (%p2145_p5), %s2734_s28, 2048, %s2732_s9, %s2744_s10, %s2070_s26, %s2070_s26, %s2071_s25  }
 0x320 PF: > { %p1896_p1 = scmp.ge.s32.totalorder %s2066_s24, 2  ;;  %s1624_s29 = sand.u32 1, %s2054_s21  }
 0x321   : > { %s1625_s12 = scalar_lea.sflag [#allocation3], %s1624_s29 }
 0x322   : > { %p1893_p2 = pnand %p1896_p1, %p2149_p6 }
 0x324   : > { %2049 = dma.done.wait (!%p1893_p2), %s1625_s12, 2048  }
 0x325   : > { %2051 = vsyncadd (!%p1893_p2), %s1625_s12, 4294965248  ;;  %p16_p3 = scmp.ge.s32.totalorder %s2132_s27, 4   ;;  %s2815_s21 = smov %s2058_s22 }
 0x326   : > { %s2816_s22 = smov %s2062_s23  ;;  %s2817_s23 = smov %s2143_s30 }
 0x327   : > { %s2818_s24 = smov %s2132_s27  ;;  %18 = sbr.rel (!%p16_p3) target bundleno = 3 (0x3), region = 82 }
 0x32e   :  { %1630 = vsyncpa [#allocation3], 1 }
 0x32f   :  { %1632 = vsyncpa [#allocation3 + $0x1], 1 }

</bundles_post_ra>
